<compile_context>
chip_gen: v5e
topology: v5e:2x2
jax: 0.10.0
libtpu: 0.0.40
codegen_flags: <defaults>
</compile_context>

<pallas_src>
import functools

import jax
import jax.numpy as jnp
from jax.experimental import pallas as pl
from jax.experimental.pallas import tpu as pltpu


def _round_up(x: int, m: int) -> int:
    return ((x + m - 1) // m) * m


def _charlier_kan_kernel(x_ref, w_ref, out_ref, basis_ref, *,
                         degree: int, a: float, input_dim: int):
    """One (batch_tile, out_tile) block of the CharlierKAN forward.

    x_ref:     (tb, input_dim)                 f32            VMEM
    w_ref:     ((degree+1)*input_dim, tn)      compute_dtype  VMEM (degree-major)
    out_ref:   (tb, tn)                        f32            VMEM
    basis_ref: (tb, (degree+1)*input_dim)      compute_dtype  VMEM scratch
    """
    bdt = basis_ref.dtype
    inv_a = 1.0 / a

    x = x_ref[...].astype(jnp.float32)
    s = jax.nn.sigmoid(x)            # torch.sigmoid(x)
    t = s * (-inv_a)                 # the -x/a term of the recurrence (f32)

    # C_0(x) = 1
    c_prev = jnp.ones_like(s)
    basis_ref[:, 0:input_dim] = c_prev.astype(bdt)

    if degree >= 1:
        # C_1(x) = -x/a + 1
        c_curr = t + 1.0
        basis_ref[:, input_dim:2 * input_dim] = c_curr.astype(bdt)

        # C_n(x) = ((-x/a + 2n - 1) C_{n-1} - (n-1) C_{n-2}) / n
        for n in range(2, degree + 1):
            c_next = ((t + (2.0 * n - 1.0)) * c_curr
                      - (n - 1.0) * c_prev) * (1.0 / n)
            basis_ref[:, n * input_dim:(n + 1) * input_dim] = c_next.astype(bdt)
            c_prev, c_curr = c_curr, c_next

    # Single fused MXU matmul over K = (degree+1) * input_dim, f32 accumulate.
    out_ref[...] = jnp.dot(
        basis_ref[...], w_ref[...],
        preferred_element_type=jnp.float32).astype(out_ref.dtype)


def charlier_kan_forward(x, coeffs, *, a: float = 1.0,
                         batch_tile: int = 256, out_tile: int = 256,
                         compute_dtype=jnp.bfloat16):
    """JAX wrapper mirroring CharlierKANLayer.forward.

    x:      (batch, input_dim)
    coeffs: (input_dim, output_dim, degree+1)  (same layout as the nn.Parameter)
    returns (batch, output_dim) float32
    """
    batch, input_dim = x.shape
    in_dim_c, output_dim, deg_p1 = coeffs.shape
    assert in_dim_c == input_dim
    degree = deg_p1 - 1
    k_dim = deg_p1 * input_dim
    itemsize = jnp.dtype(compute_dtype).itemsize

    # (I, O, D+1) -> (D+1, I, O) -> ((D+1)*I, O): degree-major flatten so one
    # matmul contracts all degrees.  Keep this under the same jit as the
    # pallas_call so XLA materializes the re-layout once per call.
    w = (jnp.transpose(coeffs, (2, 0, 1))
         .reshape(k_dim, output_dim)
         .astype(compute_dtype))

    # --- batch tiling (pad ragged batches; tb is a multiple of 8 sublanes) ---
    tb = _round_up(min(batch_tile, _round_up(batch, 8)), 8)
    padded_batch = _round_up(batch, tb)
    x = x.astype(jnp.float32)
    if padded_batch != batch:
        x = jnp.pad(x, ((0, padded_batch - batch), (0, 0)))
    nb = padded_batch // tb

    # --- output tiling: 128-lane aligned tile, else the full dim ---
    if output_dim % 128 == 0 and out_tile % 128 == 0 and output_dim > out_tile:
        tn = out_tile
        while output_dim % tn != 0:   # keep tn a 128-multiple divisor of O
            tn -= 128
    else:
        tn = output_dim
    no = output_dim // tn

    kernel = functools.partial(_charlier_kan_kernel,
                               degree=degree, a=a, input_dim=input_dim)

    # Double-buffered x / w / out blocks + resident basis scratch, with
    # headroom; capped at 64 MiB so it is valid on v7x as well.
    vmem_bytes = (2 * tb * input_dim * 4
                  + 2 * k_dim * tn * itemsize
                  + 2 * tb * tn * 4
                  + tb * k_dim * itemsize)
    vmem_limit = int(min(max(2 * vmem_bytes + (4 << 20), 32 << 20), 64 << 20))

    cost = pl.CostEstimate(
        flops=2 * padded_batch * k_dim * output_dim,
        transcendentals=padded_batch * input_dim,
        bytes_accessed=(padded_batch * input_dim * 4
                        + k_dim * output_dim * itemsize
                        + padded_batch * output_dim * 4),
    )

    out = pl.pallas_call(
        kernel,
        out_shape=jax.ShapeDtypeStruct((padded_batch, output_dim), jnp.float32),
        grid_spec=pltpu.PrefetchScalarGridSpec(
            num_scalar_prefetch=0,
            # out-tile axis outermost, batch innermost: the weight block index
            # is constant across the inner batch loop, so each weight tile is
            # DMA'd from HBM only once.
            grid=(no, nb),
            in_specs=[
                pl.BlockSpec((tb, input_dim), lambda j, i: (i, 0)),
                pl.BlockSpec((k_dim, tn), lambda j, i: (0, j)),
            ],
            out_specs=pl.BlockSpec((tb, tn), lambda j, i: (i, j)),
            scratch_shapes=[pltpu.VMEM((tb, k_dim), compute_dtype)],
        ),
        compiler_params=pltpu.CompilerParams(
            dimension_semantics=("parallel", "parallel"),
            vmem_limit_bytes=vmem_limit),
        cost_estimate=cost,
    )(x, w)

    return out[:batch] if padded_batch != batch else out


def _charlier_ref(x, coeffs, a=1.0):
    """Pure-JAX reference (mirrors the PyTorch forward) for validation."""
    degree = coeffs.shape[-1] - 1
    s = jax.nn.sigmoid(x.astype(jnp.float32))
    basis = [jnp.ones_like(s)]
    if degree >= 1:
        basis.append(-s / a + 1.0)
    for n in range(2, degree + 1):
        basis.append(((-s / a + 2 * n - 1) * basis[n - 1]
                      - (n - 1) * basis[n - 2]) / n)
    b = jnp.stack(basis, axis=-1)                        # (B, I, D+1)
    return jnp.einsum('bid,iod->bo', b, coeffs.astype(jnp.float32))


if __name__ == "__main__":
    # Small deterministic example; batch=12 exercises the ragged-batch padding.
    batch, input_dim, output_dim, degree = 12, 32, 16, 3
    a = 1.0

    key = jax.random.PRNGKey(0)
    kx, kc = jax.random.split(key)
    x = jax.random.normal(kx, (batch, input_dim), dtype=jnp.float32)

    # nn.init.normal_(coeffs, mean=0, std=1/(input_dim*(degree+1)))
    std = 1.0 / (input_dim * (degree + 1))
    coeffs = std * jax.random.normal(
        kc, (input_dim, output_dim, degree + 1), dtype=jnp.float32)

    y_ref = _charlier_ref(x, coeffs, a=a)

    # f32 compute path: tight check against the reference.
    fwd_f32 = jax.jit(functools.partial(charlier_kan_forward, a=a,
                                        compute_dtype=jnp.float32))
    y32 = jax.block_until_ready(fwd_f32(x, coeffs))
    assert y32.shape == (batch, output_dim)
    assert jnp.allclose(y32, y_ref, atol=1e-5, rtol=1e-5), "f32 mismatch"

    # bf16 weights/basis (default fast path): f32 accumulate, looser tolerance.
    fwd_bf16 = jax.jit(functools.partial(charlier_kan_forward, a=a))
    y16 = jax.block_until_ready(fwd_bf16(x, coeffs))
    assert y16.shape == (batch, output_dim)
    assert jnp.allclose(y16, y_ref, atol=1e-2, rtol=5e-2), "bf16 mismatch"

    print("KERNEL_OK")
</pallas_src>

<mosaic_0001>
module attributes {stable_mosaic.version = 11 : i64} {
  func.func @_charlier_kan_kernel(%arg0: i32, %arg1: i32, %arg2: memref<16x32xf32, #tpu.memory_space<vmem>>, %arg3: memref<128x16xf32, #tpu.memory_space<vmem>>, %arg4: memref<16x16xf32, #tpu.memory_space<vmem>>, %arg5: memref<16x128xf32, #tpu.memory_space<vmem>>) attributes {dimension_semantics = [#tpu.dimension_semantics<parallel>, #tpu.dimension_semantics<parallel>], iteration_bounds = array<i64: 1, 1>, scalar_prefetch = 0 : i64, scratch_operands = 1 : i64, tpu.core_type = #tpu.core_type<tc>, window_params = [{transform_indices = @transform_0, window_bounds = array<i64: 16, 32>}, {transform_indices = @transform_1, window_bounds = array<i64: 128, 16>}, {transform_indices = @transform_2, window_bounds = array<i64: 16, 16>}]} {
    %c0 = arith.constant 0 : index
    %c0_0 = arith.constant 0 : index
    %0 = vector.load %arg2[%c0, %c0_0] : memref<16x32xf32, #tpu.memory_space<vmem>>, vector<16x32xf32>
    %1 = arith.negf %0 : vector<16x32xf32>
    %2 = math.exp %1 : vector<16x32xf32>
    %cst = arith.constant 1.000000e+00 : f32
    %3 = vector.broadcast %cst : f32 to vector<16x32xf32>
    %4 = arith.addf %3, %2 : vector<16x32xf32>
    %5 = arith.divf %3, %4 : vector<16x32xf32>
    %cst_1 = arith.constant -1.000000e+00 : f32
    %6 = vector.broadcast %cst_1 : f32 to vector<16x32xf32>
    %7 = arith.mulf %5, %6 : vector<16x32xf32>
    %cst_2 = arith.constant 1.000000e+00 : f32
    %8 = vector.broadcast %cst_2 : f32 to vector<16x32xf32>
    %c0_3 = arith.constant 0 : index
    %c0_4 = arith.constant 0 : index
    %9 = vector.load %arg5[%c0_3, %c0_4] : memref<16x128xf32, #tpu.memory_space<vmem>>, vector<16x32xf32>
    tpu.vector_store %arg5[%c0_3, %c0_4], %8 {strides = array<i32>} : memref<16x128xf32, #tpu.memory_space<vmem>>, vector<16x32xf32>,
    %cst_5 = arith.constant 1.000000e+00 : f32
    %10 = vector.broadcast %cst_5 : f32 to vector<16x32xf32>
    %11 = arith.addf %7, %10 : vector<16x32xf32>
    %c0_6 = arith.constant 0 : index
    %c32 = arith.constant 32 : index
    %12 = vector.load %arg5[%c0_6, %c32] : memref<16x128xf32, #tpu.memory_space<vmem>>, vector<16x32xf32>
    tpu.vector_store %arg5[%c0_6, %c32], %11 {strides = array<i32>} : memref<16x128xf32, #tpu.memory_space<vmem>>, vector<16x32xf32>,
    %cst_7 = arith.constant 3.000000e+00 : f32
    %13 = vector.broadcast %cst_7 : f32 to vector<16x32xf32>
    %14 = arith.addf %7, %13 : vector<16x32xf32>
    %15 = arith.mulf %14, %11 : vector<16x32xf32>
    %cst_8 = arith.constant 1.000000e+00 : f32
    %16 = vector.broadcast %cst_8 : f32 to vector<16x32xf32>
    %17 = arith.mulf %16, %8 : vector<16x32xf32>
    %18 = arith.subf %15, %17 : vector<16x32xf32>
    %cst_9 = arith.constant 5.000000e-01 : f32
    %19 = vector.broadcast %cst_9 : f32 to vector<16x32xf32>
    %20 = arith.mulf %18, %19 : vector<16x32xf32>
    %c0_10 = arith.constant 0 : index
    %c64 = arith.constant 64 : index
    %21 = vector.load %arg5[%c0_10, %c64] : memref<16x128xf32, #tpu.memory_space<vmem>>, vector<16x32xf32>
    tpu.vector_store %arg5[%c0_10, %c64], %20 {strides = array<i32>} : memref<16x128xf32, #tpu.memory_space<vmem>>, vector<16x32xf32>,
    %cst_11 = arith.constant 5.000000e+00 : f32
    %22 = vector.broadcast %cst_11 : f32 to vector<16x32xf32>
    %23 = arith.addf %7, %22 : vector<16x32xf32>
    %24 = arith.mulf %23, %20 : vector<16x32xf32>
    %cst_12 = arith.constant 2.000000e+00 : f32
    %25 = vector.broadcast %cst_12 : f32 to vector<16x32xf32>
    %26 = arith.mulf %25, %11 : vector<16x32xf32>
    %27 = arith.subf %24, %26 : vector<16x32xf32>
    %cst_13 = arith.constant 0.333333343 : f32
    %28 = vector.broadcast %cst_13 : f32 to vector<16x32xf32>
    %29 = arith.mulf %27, %28 : vector<16x32xf32>
    %c0_14 = arith.constant 0 : index
    %c96 = arith.constant 96 : index
    %30 = vector.load %arg5[%c0_14, %c96] : memref<16x128xf32, #tpu.memory_space<vmem>>, vector<16x32xf32>
    tpu.vector_store %arg5[%c0_14, %c96], %29 {strides = array<i32>} : memref<16x128xf32, #tpu.memory_space<vmem>>, vector<16x32xf32>,
    %c0_15 = arith.constant 0 : index
    %c0_16 = arith.constant 0 : index
    %31 = vector.load %arg5[%c0_15, %c0_16] : memref<16x128xf32, #tpu.memory_space<vmem>>, vector<16x128xf32>
    %c0_17 = arith.constant 0 : index
    %c0_18 = arith.constant 0 : index
    %32 = vector.load %arg3[%c0_17, %c0_18] : memref<128x16xf32, #tpu.memory_space<vmem>>, vector<128x16xf32>
    %cst_19 = arith.constant dense<0.000000e+00> : vector<16x16xf32>
    %33 = tpu.matmul %31, %32, %cst_19 {dimension_numbers = #tpu.dot_dimension_numbers<[1], [0], [0], [1], [0, 0, 1, 1], [], []>} : vector<16x128xf32>, vector<128x16xf32>, vector<16x16xf32> -> vector<16x16xf32>
    %c0_20 = arith.constant 0 : index
    %c0_21 = arith.constant 0 : index
    %34 = vector.load %arg4[%c0_20, %c0_21] : memref<16x16xf32, #tpu.memory_space<vmem>>, vector<16x16xf32>
    tpu.vector_store %arg4[%c0_20, %c0_21], %33 {strides = array<i32>} : memref<16x16xf32, #tpu.memory_space<vmem>>, vector<16x16xf32>,
    return
  }
  func.func @transform_0(%arg0: i32, %arg1: i32) -> (i32, i32) {
    %c0_i32 = arith.constant 0 : i32
    %c0_i32_0 = arith.constant 0 : i32
    return %arg1, %c0_i32 : i32, i32
  }
  func.func @transform_1(%arg0: i32, %arg1: i32) -> (i32, i32) {
    %c0_i32 = arith.constant 0 : i32
    %c0_i32_0 = arith.constant 0 : i32
    return %c0_i32, %arg0 : i32, i32
  }
  func.func @transform_2(%arg0: i32, %arg1: i32) -> (i32, i32) {
    %c0_i32 = arith.constant 0 : i32
    return %arg1, %arg0 : i32, i32
  }
}

</mosaic_0001>

<bundles_post_ra>
// kernel: charlier_kan_forward.1
= control target key start
LH: loop header
LB: loop body
LE: loop exit
PB: predicated region body
PF: predicated region fallthrough
CT: control target
= control target key end

     0   :  { %s322_s0 = inlined_call_operand.vmem [shape: f32[16,32], index: 0, kind: input, shape index: {}]   ;;  %s323_s1 = inlined_call_operand.vmem [shape: f32[128,16], index: 1, kind: input, shape index: {}]   ;;  %s324_s2 = inlined_call_operand.hbm [shape: f32[16,16], index: 2, kind: output, shape index: {}]  }
   0x1   :  { %v12_v0 = vld [vmem:[%s322_s0] sm:$0xff]  ;;  %v13_v1 = vld [vmem:[%s322_s0 + $0x8] sm:$0xff] }
   0x2   :  { %7 = vsyncpa [#allocation4], 0  ;;  %v172_v2 = vmul.f32 -1.442695, %v12_v0  ;;  %v173_v3 = vmul.f32 -1.442695, %v13_v1 }
   0x3   :  { %v127_v16 = vld [vmem:[%s323_s1 + $0x78] sm:$0xff]  ;;  %v126_v17 = vld [vmem:[%s323_s1 + $0x70] sm:$0xff]  ;;  %vm54_vm2 = vcmask 261120   ;;  %v233_v20 = vmov 1.0   ;;  %v125_v22 = vld [vmem:[%s323_s1 + $0x68] sm:$0xff]  ;;  %s234_s26 = smov 32  }
   0x4   :  { %199 = vpow2.f32 %v172_v2  ;;  %128 = vmatpush.msra.mxu0 %v127_v16  ;;  %176 = vmatpush.msra.mxu1 %v127_v16  ;;  %55 = vst.msk [vmem:[#allocation2] sm:$0xff] %vm54_vm2, %v233_v20  ;;  %v124_v28 = vld [vmem:[%s323_s1 + $0x60] sm:$0xff]  ;;  %v123_v31 = vld [vmem:[%s323_s1 + $0x58] sm:$0xff]  ;;  %v122_v36 = vld [vmem:[%s323_s1 + $0x50] sm:$0xff]  ;;  %s235_s5 = smov 64   ;;  %s236_s8 = smov 96  }
   0x5   :  { %201 = vpow2.f32 %v173_v3  ;;  %56 = vst.msk [vmem:[#allocation2 + $0x8] sm:$0xff] %vm54_vm2, %v233_v20  ;;  %v121_v40 = vld [vmem:[%s323_s1 + $0x48] sm:$0xff]  ;;  %v120_v44 = vld [vmem:[%s323_s1 + $0x40] sm:$0xff]  ;;  %v119_v48 = vld [vmem:[%s323_s1 + $0x38] sm:$0xff]  ;;  %vm67_vm9 = vcmask 523520   ;;  %vm86_vm10 = vcmask 785920  }
   0x6   :  { %129 = vmatpush.msra.mxu0 %v126_v17  ;;  %177 = vmatpush.msra.mxu1 %v126_v17  ;;  %v118_v53 = vld [vmem:[%s323_s1 + $0x30] sm:$0xff]  ;;  %v117_v56 = vld [vmem:[%s323_s1 + $0x28] sm:$0xff]  ;;  %v116_v63 = vld [vmem:[%s323_s1 + $0x20] sm:$0xff]  ;;  %vm107_vm11 = vcmask 1048320   ;;  %vm151_vm12 = vcmask 130048   ;;  %s160_s21 = sshll.u32 %s324_s2, 4  ;;  %s161_s21 = int_to_ptr.hbm [resolvable:$true] %s160_s21 }
   0x7   :  { %v115_v0 = vld [vmem:[%s323_s1 + $0x18] sm:$0xff]  ;;  %v114_v1 = vld [vmem:[%s323_s1 + $0x10] sm:$0xff]  ;;  %v113_v2 = vld [vmem:[%s323_s1 + $0x8] sm:$0xff]  ;;  %s238_s22 = smov 128   ;;  %s239_s23 = smov 8  }
   0x8   :  { %130 = vmatpush.msra.mxu0 %v125_v22  ;;  %178 = vmatpush.msra.mxu1 %v125_v22  ;;  %v112_v3 = vld [vmem:[%s323_s1] sm:$0xff]  ;;  %s237_s1 = smov [#allocation3]  }
   0x9   :  { %s158_s18 = sshll.u32 %s237_s1, 4  ;;  %s159_s18 = int_to_ptr.vmem [resolvable:$true] %s158_s18 }
   0xa   :  { %v200_v4 = vpop.eup %199  ;;  %131 = vmatpush.msra.mxu0 %v124_v28  ;;  %179 = vmatpush.msra.mxu1 %v124_v28 }
   0xb   :  { %v202_v5 = vpop.eup %201  ;;  %v20_v6 = vadd.f32 1.0, %v200_v4 }
   0xc   :  { %v21_v7 = vadd.f32 1.0, %v202_v5  ;;  %132 = vmatpush.msra.mxu0 %v123_v31  ;;  %180 = vmatpush.msra.mxu1 %v123_v31 }
   0xd   :  { %203 = vrcp.f32 %v20_v6  ;;  %vm27_vm0 = vweird.f32 %v20_v6  ;;  %v31_v11 = vand.u32 2147483647, %v20_v6  ;;  %v33_v12 = vand.u32 2147483648, %v20_v6 }
   0xe   :  { %205 = vrcp.f32 %v21_v7  ;;  %v48_v14 = vand.u32 2147483648, %v21_v7  ;;  %vm42_vm3 = vweird.f32 %v21_v7  ;;  %v46_v19 = vand.u32 2147483647, %v21_v7  ;;  %133 = vmatpush.msra.mxu0 %v122_v36  ;;  %181 = vmatpush.msra.mxu1 %v122_v36 }
   0xf   :  { %v34_v24 = vor.u32 1.1754944e-38, %v33_v12  ;;  %vm32_vm6 = vcmp.eq.f32.partialorder %v31_v11, 8.507059e+37 }
  0x10   :  { %v49_v27 = vor.u32 1.1754944e-38, %v48_v14  ;;  %vm47_vm8 = vcmp.eq.f32.partialorder %v46_v19, 8.507059e+37  ;;  %134 = vmatpush.msra.mxu0 %v121_v40  ;;  %182 = vmatpush.msra.mxu1 %v121_v40 }
  0x12   :  { %135 = vmatpush.msra.mxu0 %v120_v44  ;;  %183 = vmatpush.msra.mxu1 %v120_v44 }
  0x13   :  { %v204_v8 = vpop.eup %203 }
  0x14   :  { %v206_v9 = vpop.eup %205  ;;  %v23_v10 = vmul.f32 %v204_v8, %v20_v6  ;;  %vm28_vm1 = vweird.f32 %v204_v8  ;;  %136 = vmatpush.msra.mxu0 %v119_v48  ;;  %184 = vmatpush.msra.mxu1 %v119_v48 }
  0x15   :  { %v38_v13 = vmul.f32 %v206_v9, %v21_v7  ;;  %vm43_vm4 = vweird.f32 %v206_v9  ;;  %vm272_vm5 = vmor %vm27_vm0, %vm28_vm1 }
  0x16   :  { %v24_v15 = vsub.f32 1.0, %v23_v10  ;;  %vm44_vm7 = vmor %vm42_vm3, %vm43_vm4  ;;  %137 = vmatpush.msra.mxu0 %v118_v53  ;;  %185 = vmatpush.msra.mxu1 %v118_v53 }
  0x17   :  { %v39_v18 = vsub.f32 1.0, %v38_v13 }
  0x18   :  { %v25_v21 = vmul.f32 %v204_v8, %v24_v15  ;;  %138 = vmatpush.msra.mxu0 %v117_v56  ;;  %186 = vmatpush.msra.mxu1 %v117_v56 }
  0x19   :  { %v40_v25 = vmul.f32 %v206_v9, %v39_v18 }
  0x1a   :  { %v26_v26 = vadd.f32 %v204_v8, %v25_v21  ;;  %139 = vmatpush.msra.mxu0 %v116_v63  ;;  %187 = vmatpush.msra.mxu1 %v116_v63 }
  0x1b   :  { %v41_v29 = vadd.f32 %v206_v9, %v40_v25 }
  0x1c   :  { %v30_v30 = vsel %vm272_vm5, %v204_v8, %v26_v26  ;;  %140 = vmatpush.msra.mxu0 %v115_v0  ;;  %188 = vmatpush.msra.mxu1 %v115_v0 }
  0x1d   :  { %v35_v32 = vsel %vm32_vm6, %v34_v24, %v30_v30  ;;  %v45_v33 = vsel %vm44_vm7, %v206_v9, %v41_v29 }
  0x1e   :  { %v52_v34 = vmul.f32 -1.0, %v35_v32  ;;  %v50_v35 = vsel %vm47_vm8, %v49_v27, %v45_v33  ;;  %141 = vmatpush.msra.mxu0 %v114_v1  ;;  %189 = vmatpush.msra.mxu1 %v114_v1 }
  0x1f   :  { %v53_v37 = vmul.f32 -1.0, %v50_v35 }
  0x20   :  { %v57_v38 = vadd.f32 1.0, %v52_v34  ;;  %v70_v39 = vadd.f32 3.0, %v52_v34  ;;  %v89_v47 = vadd.f32 5.0, %v52_v34  ;;  %142 = vmatpush.msra.mxu0 %v113_v2  ;;  %190 = vmatpush.msra.mxu1 %v113_v2 }
  0x21   :  { %v58_v41 = vadd.f32 1.0, %v53_v37  ;;  %v71_v42 = vadd.f32 3.0, %v53_v37  ;;  %v90_v51 = vadd.f32 5.0, %v53_v37 }
  0x22   :  { %61 = vrot.lane.b32.xlu0 %v57_v38, %s234_s26  ;;  %v72_v43 = vmul.f32 %v70_v39, %v57_v38  ;;  %v93_v52 = vmul.f32 2.0, %v57_v38  ;;  %143 = vmatpush.msra.mxu0 %v112_v3 }
  0x23   :  { %v73_v45 = vmul.f32 %v71_v42, %v58_v41  ;;  %v94_v59 = vmul.f32 2.0, %v58_v41  ;;  %191 = vmatpush.msra.mxu1 %v112_v3 }
  0x24   :  { %v174_v46 = vadd.f32 -1.0, %v72_v43 }
  0x25   :  { %v175_v49 = vadd.f32 -1.0, %v73_v45 }
  0x26   :  { %v76_v50 = vmul.f32 0.5, %v174_v46 }
  0x27   :  { %v77_v55 = vmul.f32 0.5, %v175_v49 }
  0x28   :  { %80 = vrot.lane.b32.xlu1 %v76_v50, %s235_s5  ;;  %v91_v54 = vmul.f32 %v89_v47, %v76_v50 }
  0x29   :  { %v92_v57 = vmul.f32 %v90_v51, %v77_v55 }
  0x2a   :  { %63 = vrot.lane.b32.xlu0 %v58_v41, %s234_s26  ;;  %v95_v58 = vsub.f32 %v91_v54, %v93_v52 }
  0x2b   :  { %v96_v61 = vsub.f32 %v92_v57, %v94_v59 }
  0x2c   :  { %v97_v60 = vmul.f32 0.33333334, %v95_v58 }
  0x2d   :  { %v98_v62 = vmul.f32 0.33333334, %v96_v61 }
  0x2e   :  { %101 = vrot.lane.b32.xlu2 %v97_v60, %s236_s8 }
  0x30   :  { %82 = vrot.lane.b32.xlu1 %v77_v55, %s235_s5 }
  0x36   :  { %103 = vrot.lane.b32.xlu2 %v98_v62, %s236_s8 }
  0x88   :  { %v102_v5 = vpop.permute.xlu2 %101 }
  0x90   :  { %v104_v8 = vpop.permute.xlu2 %103 }
  0x94   :  { %v62_v4 = vpop.permute.xlu0 %61 }
  0x95   :  { %68 = vst.msk [vmem:[#allocation2] sm:$0xff] %vm67_vm9, %v62_v4 }
  0x9a   :  { %v81_v6 = vpop.permute.xlu1 %80 }
  0x9b   :  { %87 = vst.msk [vmem:[#allocation2] sm:$0xff] %vm86_vm10, %v81_v6 }
  0x9c   :  { %108 = vst.msk [vmem:[#allocation2] sm:$0xff] %vm107_vm11, %v102_v5  ;;  %v64_v7 = vpop.permute.xlu0 %63 }
  0x9d   :  { %69 = vst.msk [vmem:[#allocation2 + $0x8] sm:$0xff] %vm67_vm9, %v64_v7 }
  0xa2   :  { %v83_v9 = vpop.permute.xlu1 %82 }
  0xa3   :  { %88 = vst.msk [vmem:[#allocation2 + $0x8] sm:$0xff] %vm86_vm10, %v83_v9  ;;  %v110_v10 = vld [vmem:[#allocation2] sm:$0xff] }
  0xa4   :  { %109 = vst.msk [vmem:[#allocation2 + $0x8] sm:$0xff] %vm107_vm11, %v104_v8  ;;  %144 = vmatmul.f32.vlgmr.msra.gmra.mxu0 %v110_v10 }
  0xab   :  { %v111_v11 = vld [vmem:[#allocation2 + $0x8] sm:$0xff] }
  0xac   :  { %147 = vmatmul.f32.vlgmr.msra.gmra.mxu1 %v111_v11 }
 0x121   :  { %v145_v12 = vpop.f32.mrf.mxu0 }
 0x122   :  { %152 = vst.msk [vmem:[#allocation3] sm:$0xff] %vm151_vm12, %v145_v12 }
 0x129   :  { %v148_v13 = vpop.f32.mrf.mxu1 }
 0x12a   :  { %153 = vst.msk [vmem:[#allocation3 + $0x8] sm:$0xff] %vm151_vm12, %v148_v13 }
 0x12b   :  { %166 = dma.vmem_to_hbm [thread:$0]  %s159_s18, 256, %s161_s21, [#allocation4], %s238_s22, %s238_s22, %s239_s23  }
 0x12c   :  { %231 = dma.done.wait [#allocation4], 256  }
 0x12d   :  { %232 = vsyncadd [#allocation4], 4294967040 }
 0x12e   :  { %171 = vsyncpa [#allocation4], 1 }

</bundles_post_ra>
